<compile_context>
chip_gen: v7x
topology: tpu7x:2x2x1
jax: 0.10.0
libtpu: 0.0.40
codegen_flags: <defaults>
</compile_context>

<pallas_src>
import math

import jax
import jax.numpy as jnp
from jax import lax
from jax.experimental import pallas as pl
from jax.experimental.pallas import tpu as pltpu

_SQRT1_2 = 0.7071067811865476  # 1/sqrt(2)


def _round_up(x, m):
    return ((x + m - 1) // m) * m


def _vmem_capacity_bytes():
    try:
        return int(pltpu.get_tpu_info().vmem_capacity_bytes)
    except Exception:
        return 64 * 1024 * 1024  # conservative per-TC floor (v7x)


# --------------------------------------------------------------------------- #
# Kernels
# --------------------------------------------------------------------------- #
def _mlp_kernel_single(x_ref, w1_ref, b1_ref, w2_ref, b2_ref, o_ref):
    """Whole hidden dim resident in VMEM: one fused pass, no accumulator."""
    # x_ref: (TM, C) bf16   w1_ref: (C, H) bf16   b1_ref: (1, H)
    # w2_ref: (H, C) bf16   b2_ref: (1, C)        o_ref:  (TM, C)
    h = jnp.dot(x_ref[...], w1_ref[...], preferred_element_type=jnp.float32)
    h = h + b1_ref[...].astype(jnp.float32)
    # exact GELU (erf formulation) — matches torch.nn.GELU() default
    h = 0.5 * h * (1.0 + lax.erf(h * _SQRT1_2))
    y = jnp.dot(h.astype(w2_ref.dtype), w2_ref[...],
                preferred_element_type=jnp.float32)
    # dropout: identity at inference
    # TODO(synk): training-mode dropout would need pltpu.prng_seed /
    # pltpu.prng_random_bits masking; not needed for forward inference.
    o_ref[...] = (y + b2_ref[...].astype(jnp.float32)).astype(o_ref.dtype)


def _mlp_kernel_multi(x_ref, w1_ref, b1_ref, w2_ref, b2_ref, o_ref, acc_ref):
    """Hidden dim streamed in tiles; persistent f32 accumulator over axis 1."""
    # x_ref: (TM, C)   w1_ref: (C, TH)   b1_ref: (1, TH)
    # w2_ref: (TH, C)  b2_ref: (1, C)    o_ref: (TM, C)   acc_ref: (TM, C) f32
    j = pl.program_id(1)

    @pl.when(j == 0)
    def _():
        acc_ref[...] = jnp.zeros_like(acc_ref)

    h = jnp.dot(x_ref[...], w1_ref[...], preferred_element_type=jnp.float32)
    h = h + b1_ref[...].astype(jnp.float32)
    h = 0.5 * h * (1.0 + lax.erf(h * _SQRT1_2))
    acc_ref[...] += jnp.dot(h.astype(w2_ref.dtype), w2_ref[...],
                            preferred_element_type=jnp.float32)

    @pl.when(j == pl.num_programs(1) - 1)
    def _():
        y = acc_ref[...] + b2_ref[...].astype(jnp.float32)
        o_ref[...] = y.astype(o_ref.dtype)


# --------------------------------------------------------------------------- #
# Tile selection
# --------------------------------------------------------------------------- #
def _pick_hidden_tile(C, H, w_itemsize, budget):
    """Pick the hidden (4*C) tile. Prefer full residency (th == H)."""
    if H % 128 != 0:
        return H  # full-extent block is the only layout-legal choice
    # Whole W1 + W2 resident (single-buffered, constant index_map)?
    if 2 * C * H * w_itemsize <= budget // 2:
        return H
    # Streaming: largest 128-multiple divisor of H whose double-buffered
    # W1/W2 slabs fit half the budget; floor at 256 to fill the 256-wide MXU.
    cap = max(128, (budget // 2) // max(1, 4 * C * w_itemsize))
    th = H
    while th > 128 and (th > cap or H % th != 0):
        th -= 128
    if th < 256 and H % 256 == 0:
        th = 256
    return th


def _pick_row_tile(rows, C, th, grid_h, x_it, out_it, w_it, budget, align):
    """Pick the row tile within the remaining VMEM budget."""
    weight_bytes = (2 if grid_h > 1 else 1) * 2 * C * th * w_it
    per_row = (2 * C * x_it            # x tile, double-buffered (bf16)
               + 2 * C * out_it        # out tile, double-buffered
               + 6 * th                # f32 hidden intermediate + bf16 cast
               + (4 * C if grid_h > 1 else 0))   # f32 accumulator
    avail = max(budget - weight_bytes, align * per_row)
    tm = int(avail // per_row)
    tm = max(align, min(1024, (tm // align) * align))
    # Keep >= 2 row blocks so the "parallel" axis can shard across v7x's two
    # TensorCores (negligible cost on single-core v5e/v6e).
    if rows >= 2 * align:
        tm = min(tm, _round_up(-(-rows // 2), align))
    if rows <= tm:
        tm = rows
    return tm


# --------------------------------------------------------------------------- #
# Wrapper
# --------------------------------------------------------------------------- #
def mlp_pallas(x, w_fc, b_fc, w_proj, b_proj, *, row_tile=None, hidden_tile=None,
               matmul_dtype=jnp.bfloat16):
    """MLP forward: gelu(x @ w_fc + b_fc) @ w_proj + b_proj (dropout = identity).

    Weights are stored pre-transposed vs torch: w_fc (C, 4C), w_proj (4C, C).
    b_fc / b_proj may be None (bias=False path).  Matmuls run in `matmul_dtype`
    (bf16 by default — MXU-native) with f32 accumulation; output keeps x.dtype.
    """
    orig_shape = x.shape
    C = orig_shape[-1]
    H = 4 * C
    assert w_fc.shape == (C, H), w_fc.shape
    assert w_proj.shape == (H, C), w_proj.shape
    if b_fc is None:
        b_fc = jnp.zeros((H,), dtype=jnp.float32)
    if b_proj is None:
        b_proj = jnp.zeros((C,), dtype=jnp.float32)

    out_dtype = x.dtype
    rows = math.prod(orig_shape[:-1])

    mm_dtype = jnp.dtype(matmul_dtype)
    x2 = x.reshape(rows, C).astype(mm_dtype)
    w1 = w_fc.astype(mm_dtype)
    w2 = w_proj.astype(mm_dtype)
    b1 = b_fc.reshape(1, H)
    b2 = b_proj.reshape(1, C)

    x_it = mm_dtype.itemsize
    w_it = mm_dtype.itemsize
    out_it = jnp.dtype(out_dtype).itemsize
    b_it = jnp.dtype(b1.dtype).itemsize

    vmem_cap = _vmem_capacity_bytes()
    budget = int(0.55 * vmem_cap)     # ~70 MiB on v5e/v6e, ~35 MiB on v7x

    th = hidden_tile or _pick_hidden_tile(C, H, w_it, budget)
    assert H % th == 0, (H, th)       # keeps padded hidden columns impossible
    grid_h = H // th

    align = 16 if mm_dtype.itemsize <= 2 else 8
    tm = row_tile or _pick_row_tile(rows, C, th, grid_h, x_it, out_it, w_it,
                                    budget, align)
    tm = min(tm, rows)
    grid_m = pl.cdiv(rows, tm)

    if grid_h == 1:
        # Weights fully resident: constant weight index_maps -> one weight DMA
        # for the whole kernel; no accumulator scratch.
        grid = (grid_m,)
        dims = ("parallel",)
        in_specs = [
            pl.BlockSpec((tm, C), lambda i: (i, 0)),   # x rows
            pl.BlockSpec((C, H), lambda i: (0, 0)),    # W1 (resident)
            pl.BlockSpec((1, H), lambda i: (0, 0)),    # b1 (resident)
            pl.BlockSpec((H, C), lambda i: (0, 0)),    # W2 (resident)
            pl.BlockSpec((1, C), lambda i: (0, 0)),    # b2 (resident)
        ]
        out_spec = pl.BlockSpec((tm, C), lambda i: (i, 0))
        scratch = []
        kernel = _mlp_kernel_single
    else:
        grid = (grid_m, grid_h)
        dims = ("parallel", "arbitrary")
        in_specs = [
            pl.BlockSpec((tm, C), lambda i, j: (i, 0)),   # x rows (reused over j)
            pl.BlockSpec((C, th), lambda i, j: (0, j)),   # W1 hidden-tile
            pl.BlockSpec((1, th), lambda i, j: (0, j)),   # b1 hidden-tile
            pl.BlockSpec((th, C), lambda i, j: (j, 0)),   # W2 hidden-tile
            pl.BlockSpec((1, C), lambda i, j: (0, 0)),    # b2
        ]
        out_spec = pl.BlockSpec((tm, C), lambda i, j: (i, 0))
        scratch = [pltpu.VMEM((tm, C), jnp.float32)]
        kernel = _mlp_kernel_multi

    est = (2 * tm * C * x_it + 2 * tm * C * out_it
           + (2 if grid_h > 1 else 1) * 2 * C * th * w_it
           + 2 * (H + C) * b_it
           + 6 * tm * th
           + (4 * tm * C if grid_h > 1 else 0))
    # ~85% of physical VMEM max: leaves Mosaic headroom (esp. on v7x's 64 MiB).
    vmem_limit = int(min(max(2 * est, 32 * 1024 * 1024), int(0.85 * vmem_cap)))

    out = pl.pallas_call(
        kernel,
        out_shape=jax.ShapeDtypeStruct((rows, C), out_dtype),
        grid_spec=pltpu.PrefetchScalarGridSpec(
            num_scalar_prefetch=0,
            grid=grid,
            in_specs=in_specs,
            out_specs=out_spec,
            scratch_shapes=scratch,
        ),
        compiler_params=pltpu.CompilerParams(
            dimension_semantics=dims,
            vmem_limit_bytes=vmem_limit,
        ),
    )(x2, w1, b1, w2, b2)

    return out.reshape(orig_shape)


# --------------------------------------------------------------------------- #
# Reference + test
# --------------------------------------------------------------------------- #
def _reference_mlp(x, w_fc, b_fc, w_proj, b_proj, mm_dtype=None):
    if mm_dtype is not None:
        xf = x.astype(mm_dtype).astype(jnp.float32)
        w1 = w_fc.astype(mm_dtype).astype(jnp.float32)
        w2 = w_proj.astype(mm_dtype).astype(jnp.float32)
    else:
        xf = x.astype(jnp.float32)
        w1 = w_fc.astype(jnp.float32)
        w2 = w_proj.astype(jnp.float32)
    h = xf @ w1 + b_fc.astype(jnp.float32)
    h = 0.5 * h * (1.0 + lax.erf(h * _SQRT1_2))
    if mm_dtype is not None:
        h = h.astype(mm_dtype).astype(jnp.float32)
    y = h @ w2 + b_proj.astype(jnp.float32)
    return y.astype(x.dtype)


def _make_params(key, C, dtype=jnp.float32):
    H = 4 * C
    k1, k2, k3, k4 = jax.random.split(key, 4)
    bnd1 = 1.0 / math.sqrt(C)
    bnd2 = 1.0 / math.sqrt(H)
    w_fc = jax.random.uniform(k1, (C, H), dtype, -bnd1, bnd1)
    b_fc = jax.random.uniform(k2, (H,), dtype, -bnd1, bnd1)
    w_proj = jax.random.uniform(k3, (H, C), dtype, -bnd2, bnd2)
    b_proj = jax.random.uniform(k4, (C,), dtype, -bnd2, bnd2)
    return w_fc, b_fc, w_proj, b_proj


def _check(out, x, w_fc, b_fc, w_proj, b_proj):
    # Matched-precision reference (bf16 matmuls, f32 accumulation): tight.
    ref_bf16 = _reference_mlp(x, w_fc, b_fc, w_proj, b_proj, mm_dtype=jnp.bfloat16)
    err_m = float(jnp.max(jnp.abs(out - ref_bf16)))
    assert jnp.allclose(out, ref_bf16, atol=5e-3, rtol=5e-3), err_m
    # Pure-f32 reference: loose (bf16 MXU path vs f32 math).
    ref_f32 = _reference_mlp(x, w_fc, b_fc, w_proj, b_proj)
    err_f = float(jnp.max(jnp.abs(out - ref_f32)))
    assert jnp.allclose(out, ref_f32, atol=3e-2, rtol=3e-2), err_f


if __name__ == "__main__":
    key = jax.random.PRNGKey(0)
    kx1, kp1, kx2, kp2 = jax.random.split(key, 4)

    # --- Test 1: tiny shape, resident-weight single-step path ------------- #
    B, S, C = 2, 8, 32          # batch=2, seq=8, n_embd=32 -> hidden=128
    x = jax.random.normal(kx1, (B, S, C), dtype=jnp.float32)
    w_fc, b_fc, w_proj, b_proj = _make_params(kp1, C)
    out = jax.block_until_ready(mlp_pallas(x, w_fc, b_fc, w_proj, b_proj))
    assert out.shape == x.shape
    _check(out, x, w_fc, b_fc, w_proj, b_proj)

    # --- Test 2: forced streaming path (multi-step accumulator, edge rows) - #
    B2, S2, C2 = 4, 50, 128     # rows=200 (ragged edge row block), hidden=512
    x2 = jax.random.normal(kx2, (B2, S2, C2), dtype=jnp.float32)
    w_fc2, b_fc2, w_proj2, b_proj2 = _make_params(kp2, C2)
    out2 = jax.block_until_ready(
        mlp_pallas(x2, w_fc2, b_fc2, w_proj2, b_proj2,
                   row_tile=64, hidden_tile=256))
    assert out2.shape == x2.shape
    _check(out2, x2, w_fc2, b_fc2, w_proj2, b_proj2)

    print("KERNEL_OK")
</pallas_src>

<mosaic_0001>
module attributes {stable_mosaic.version = 11 : i64} {
  func.func @_mlp_kernel_single(%arg0: i32, %arg1: memref<16x32xbf16, #tpu.memory_space<vmem>>, %arg2: memref<32x128xbf16, #tpu.memory_space<vmem>>, %arg3: memref<1x128xf32, #tpu.memory_space<vmem>>, %arg4: memref<128x32xbf16, #tpu.memory_space<vmem>>, %arg5: memref<1x32xf32, #tpu.memory_space<vmem>>, %arg6: memref<16x32xf32, #tpu.memory_space<vmem>>) attributes {dimension_semantics = [#tpu.dimension_semantics<parallel>], iteration_bounds = array<i64: 1>, scalar_prefetch = 0 : i64, scratch_operands = 0 : i64, tpu.core_type = #tpu.core_type<tc>, window_params = [{transform_indices = @transform_0, window_bounds = array<i64: 16, 32>}, {pipeline_mode = #tpu.pipeline_mode<synchronous>, transform_indices = @transform_1, window_bounds = array<i64: 32, 128>}, {pipeline_mode = #tpu.pipeline_mode<synchronous>, transform_indices = @transform_2, window_bounds = array<i64: 1, 128>}, {pipeline_mode = #tpu.pipeline_mode<synchronous>, transform_indices = @transform_3, window_bounds = array<i64: 128, 32>}, {pipeline_mode = #tpu.pipeline_mode<synchronous>, transform_indices = @transform_4, window_bounds = array<i64: 1, 32>}, {transform_indices = @transform_5, window_bounds = array<i64: 16, 32>}]} {
    %c0 = arith.constant 0 : index
    %c0_0 = arith.constant 0 : index
    %0 = vector.load %arg1[%c0, %c0_0] : memref<16x32xbf16, #tpu.memory_space<vmem>>, vector<16x32xbf16>
    %c0_1 = arith.constant 0 : index
    %c0_2 = arith.constant 0 : index
    %1 = vector.load %arg2[%c0_1, %c0_2] : memref<32x128xbf16, #tpu.memory_space<vmem>>, vector<32x128xbf16>
    %cst = arith.constant dense<0.000000e+00> : vector<16x128xf32>
    %2 = tpu.matmul %0, %1, %cst {dimension_numbers = #tpu.dot_dimension_numbers<[1], [0], [0], [1], [0, 0, 1, 1], [], []>} : vector<16x32xbf16>, vector<32x128xbf16>, vector<16x128xf32> -> vector<16x128xf32>
    %c0_3 = arith.constant 0 : index
    %c0_4 = arith.constant 0 : index
    %3 = vector.load %arg3[%c0_3, %c0_4] : memref<1x128xf32, #tpu.memory_space<vmem>>, vector<1x128xf32>
    %4 = vector.broadcast %3 : vector<1x128xf32> to vector<16x128xf32>
    %5 = arith.addf %2, %4 : vector<16x128xf32>
    %cst_5 = arith.constant 5.000000e-01 : f32
    %6 = vector.broadcast %cst_5 : f32 to vector<16x128xf32>
    %7 = arith.mulf %6, %5 : vector<16x128xf32>
    %cst_6 = arith.constant 0.707106769 : f32
    %8 = vector.broadcast %cst_6 : f32 to vector<16x128xf32>
    %9 = arith.mulf %5, %8 : vector<16x128xf32>
    %10 = math.erf %9 : vector<16x128xf32>
    %cst_7 = arith.constant 1.000000e+00 : f32
    %11 = vector.broadcast %cst_7 : f32 to vector<16x128xf32>
    %12 = arith.addf %11, %10 : vector<16x128xf32>
    %13 = arith.mulf %7, %12 : vector<16x128xf32>
    %14 = arith.truncf %13 : vector<16x128xf32> to vector<16x128xbf16>
    %c0_8 = arith.constant 0 : index
    %c0_9 = arith.constant 0 : index
    %15 = vector.load %arg4[%c0_8, %c0_9] : memref<128x32xbf16, #tpu.memory_space<vmem>>, vector<128x32xbf16>
    %cst_10 = arith.constant dense<0.000000e+00> : vector<16x32xf32>
    %16 = tpu.matmul %14, %15, %cst_10 {dimension_numbers = #tpu.dot_dimension_numbers<[1], [0], [0], [1], [0, 0, 1, 1], [], []>} : vector<16x128xbf16>, vector<128x32xbf16>, vector<16x32xf32> -> vector<16x32xf32>
    %c0_11 = arith.constant 0 : index
    %c0_12 = arith.constant 0 : index
    %17 = vector.load %arg5[%c0_11, %c0_12] : memref<1x32xf32, #tpu.memory_space<vmem>>, vector<1x32xf32>
    %18 = vector.broadcast %17 : vector<1x32xf32> to vector<16x32xf32>
    %19 = arith.addf %16, %18 : vector<16x32xf32>
    %c0_13 = arith.constant 0 : index
    %c0_14 = arith.constant 0 : index
    %20 = vector.load %arg6[%c0_13, %c0_14] : memref<16x32xf32, #tpu.memory_space<vmem>>, vector<16x32xf32>
    tpu.vector_store %arg6[%c0_13, %c0_14], %19 {strides = array<i32>} : memref<16x32xf32, #tpu.memory_space<vmem>>, vector<16x32xf32>,
    return
  }
  func.func @transform_0(%arg0: i32) -> (i32, i32) {
    %c0_i32 = arith.constant 0 : i32
    %c0_i32_0 = arith.constant 0 : i32
    return %arg0, %c0_i32 : i32, i32
  }
  func.func @transform_1(%arg0: i32) -> (i32, i32) {
    %c0_i32 = arith.constant 0 : i32
    %c0_i32_0 = arith.constant 0 : i32
    %c0_i32_1 = arith.constant 0 : i32
    return %c0_i32, %c0_i32_0 : i32, i32
  }
  func.func @transform_2(%arg0: i32) -> (i32, i32) {
    %c0_i32 = arith.constant 0 : i32
    %c0_i32_0 = arith.constant 0 : i32
    %c0_i32_1 = arith.constant 0 : i32
    return %c0_i32, %c0_i32_0 : i32, i32
  }
  func.func @transform_3(%arg0: i32) -> (i32, i32) {
    %c0_i32 = arith.constant 0 : i32
    %c0_i32_0 = arith.constant 0 : i32
    %c0_i32_1 = arith.constant 0 : i32
    return %c0_i32, %c0_i32_0 : i32, i32
  }
  func.func @transform_4(%arg0: i32) -> (i32, i32) {
    %c0_i32 = arith.constant 0 : i32
    %c0_i32_0 = arith.constant 0 : i32
    %c0_i32_1 = arith.constant 0 : i32
    return %c0_i32, %c0_i32_0 : i32, i32
  }
  func.func @transform_5(%arg0: i32) -> (i32, i32) {
    %c0_i32 = arith.constant 0 : i32
    %c0_i32_0 = arith.constant 0 : i32
    return %arg0, %c0_i32 : i32, i32
  }
}

</mosaic_0001>

<bundles_post_ra>
// kernel: tpu_custom_call.1
= control target key start
LH: loop header
LB: loop body
LE: loop exit
PB: predicated region body
PF: predicated region fallthrough
CT: control target
= control target key end

     0   :  { %v336_v1 = vmov 0.0   ;;  %vm337_vm0 = vmmov 0   ;;  %vm52_vm1 = vcmask 261120   ;;  %s425_s0 = inlined_call_operand.vmem [shape: bf16[16,32], index: 0, kind: input, shape index: {}]   ;;  %s426_s1 = inlined_call_operand.vmem [shape: bf16[32,128], index: 1, kind: input, shape index: {}]   ;;  %s427_s2 = inlined_call_operand.vmem [shape: f32[1,128], index: 2, kind: input, shape index: {}]   ;;  %s428_s3 = inlined_call_operand.vmem [shape: bf16[128,32], index: 3, kind: input, shape index: {}]   ;;  %s429_s4 = inlined_call_operand.vmem [shape: f32[1,32], index: 4, kind: input, shape index: {}]   ;;  %s430_s5 = inlined_call_operand.hbm [shape: f32[16,32], index: 5, kind: output, shape index: {}]  }
   0x1   :  { %v297_v0 = vld [vmem:[%s426_s1] sm:$0xff]   ;;  %264 = vmatprep.subr.bf16.mxu0 %v336_v1  ;;  %272 = vmatprep.subr.bf16.mxu1 %v336_v1  ;;  %v298_v2 = vld [vmem:[%s426_s1 + $0x8] sm:$0xff]  }
   0x2   :  { %265 = vmatpush3.bf16.msra.mxu0 %v297_v0  ;;  %268 = vmatprep.mubr.msk.bf16.mxu0 %vm337_vm0, %v336_v1  ;;  %v300_v3 = vld [vmem:[%s428_s3] sm:$0xff]   ;;  %v301_v5 = vld [vmem:[%s428_s3 + $0x8] sm:$0xff]  }
   0x3   :  { %266 = vmatprep.subr.bf16.mxu0 %v336_v1  ;;  %288 = vmatprep.mubr.msk.bf16.mxu1 %vm337_vm0, %v336_v1  ;;  %v299_v4 = vld [vmem:[%s425_s0] sm:$0xff]  }
   0x4   :  { %273 = vmatpush3.bf16.msra.mxu1 %v300_v3 }
   0x5   :  { %274 = vmatprep.subr.bf16.mxu1 %v336_v1 }
   0x6   :  { %267 = vmatpush3.bf16.msra.mxu0 %v298_v2 }
   0x8   :  { %275 = vmatpush3.bf16.msra.mxu1 %v301_v5 }
   0x9   :  { %269 = vmatmul.mubr.msk.bf16.vlgmr.msra.gmra.mrb[0].mxu0 %vm52_vm1, %v299_v4 }
   0xa   :  { %10 = vsyncpa [#allocation3], 0  ;;  %276 = vmatprep.subr.bf16.mxu1 %v336_v1  ;;  %v302_v6 = vld [vmem:[%s428_s3 + $0x10] sm:$0xff]   ;;  %v303_v7 = vld [vmem:[%s428_s3 + $0x18] sm:$0xff]   ;;  %s338_s15 = smov [#allocation2]  }
   0xb   :  { %v304_v8 = vld [vmem:[%s428_s3 + $0x20] sm:$0xff]   ;;  %v305_v9 = vld [vmem:[%s428_s3 + $0x28] sm:$0xff]   ;;  %v306_v10 = vld [vmem:[%s428_s3 + $0x30] sm:$0xff]   ;;  %s227_s16 = sshll.u32 %s338_s15, 4  ;;  %s228_s16 = int_to_ptr.vmem [resolvable:$true] %s227_s16 }
   0xc   :  { %277 = vmatpush3.bf16.msra.mxu1 %v302_v6  ;;  %v307_v11 = vld [vmem:[%s428_s3 + $0x38] sm:$0xff]   ;;  %v238_v12 = vld [vmem:[%s427_s2] ss:$0 sm:$0xff]  ;;  %s312_s17 = scalar_lea.vmem %s228_s16, 256  ;;  %p317_p1 = scmp.lt.s32.totalorder %s228_s16, %s228_s16 }
   0xd   :  { %278 = vmatprep.subr.bf16.mxu1 %v336_v1  ;;  %v243_v30 = vld [vmem:[%s429_s4] ss:$0 sm:$0xff]  ;;  %p313_p0 = scmp.ne.s32.totalorder %s228_s16, %s312_s17  ;;  %p318_p2 = scmp.lt.s32.totalorder %s312_s17, %s312_s17 }
   0xf   :  { %p319_p3 = por %p318_p2, %p317_p1 }
  0x10   :  { %279 = vmatpush3.bf16.msra.mxu1 %v303_v7 }
  0x11   :  { %280 = vmatprep.subr.bf16.mxu1 %v336_v1  ;;  %p320_p4 = pnand %p319_p3, %p313_p0 }
  0x14   :  { %281 = vmatpush3.bf16.msra.mxu1 %v304_v8 }
  0x15   :  { %282 = vmatprep.subr.bf16.mxu1 %v336_v1 }
  0x18   :  { %283 = vmatpush3.bf16.msra.mxu1 %v305_v9 }
  0x19   :  { %284 = vmatprep.subr.bf16.mxu1 %v336_v1 }
  0x1c   :  { %285 = vmatpush3.bf16.msra.mxu1 %v306_v10 }
  0x1d   :  { %286 = vmatprep.subr.bf16.mxu1 %v336_v1 }
  0x20   :  { %287 = vmatpush3.bf16.msra.mxu1 %v307_v11 }
  0xdc   :  { %v90_v13 = vpop.f32.mrb[0].mxu0 }
  0xdd   :  { %v91_v14 = vadd.f32 %v238_v12, %v90_v13  ;;  %v270_v15 = vpop.f32.mrb[1].mxu0 }
  0xde   :  { %v93_v16 = vpop.f32.mrb[2].mxu0 }
  0xdf   :  { %v99_v17 = vmul.f32 0.70710677, %v91_v14  ;;  %v94_v18 = vadd.f32 %v238_v12, %v93_v16  ;;  %v271_v19 = vpop.f32.mrb[3].mxu0  ;;  %v97_v24 = vmul.f32 0.5, %v91_v14 }
  0xe1   :  { %308 = verf.f32 %v99_v17  ;;  %v100_v20 = vmul.f32 0.70710677, %v94_v18  ;;  %v98_v25 = vmul.f32 0.5, %v94_v18 }
  0xe3   :  { %310 = verf.f32 %v100_v20 }
  0xeb   :  { %v309_v21 = vpop.eup %308 }
  0xec   :  { %v103_v22 = vadd.f32 1.0, %v309_v21 }
  0xed   :  { %v311_v23 = vpop.eup %310 }
  0xee   :  { %v104_v26 = vadd.f32 1.0, %v311_v23  ;;  %v105_v27 = vmul.f32 %v103_v22, %v97_v24 }
  0xf0   :  { %v106_v28 = vmul.f32 %v104_v26, %v98_v25 }
  0xf2   :  { %v107_v29 = vpack.c.bf16 %v106_v28, %v105_v27 }
  0xf4   :  { %289 = vmatmul.mubr.bf16.vlgmr.msra.gmra.mrb[0].mxu1 %v107_v29 }
 0x1c7   :  { %v213_v31 = vpop.f32.mrb[0].mxu1 }
 0x1c8   :  { %v214_v32 = vadd.f32 %v243_v30, %v213_v31  ;;  %v290_v33 = vpop.f32.mrb[1].mxu1 }
 0x1c9   :  { %v216_v34 = vpop.f32.mrb[2].mxu1 }
 0x1ca   :  { %220 = vst.msk [vmem:[#allocation2] sm:$0xff] %vm52_vm1, %v214_v32  ;;  %v217_v35 = vadd.f32 %v243_v30, %v216_v34  ;;  %v291_v36 = vpop.f32.mrb[3].mxu1 }
 0x1cc   :  { %221 = vst.msk [vmem:[#allocation2 + $0x8] sm:$0xff] %vm52_vm1, %v217_v35 }
 0x1cd   :  { %323 = shalt.err (!%p320_p4)
}
 0x1ce   :  { %s324_s19 = scalar_lea.hbm %s430_s5, 256 }
 0x1cf   :  { %p325_p5 = scmp.ne.s32.totalorder %s430_s5, %s324_s19  ;;  %p328_p6 = scmp.lt.u32.totalorder %s324_s19, %s430_s5 }
 0x1d1   :  { %p330_p7 = pnand %p328_p6, %p325_p5 }
 0x1d3   :  { %333 = shalt.err (!%p330_p7)
}
 0x1d4   :  { %s339_s24 = smov 128   ;;  %s340_s25 = smov 8  }
 0x1d5   :  { %233 = dma.vmem_to_hbm [thread:$0]  %s228_s16, 256, %s430_s5, [#allocation3], %s339_s24, %s339_s24, %s340_s25  }
 0x1d6   :  { %334 = dma.done.wait [#allocation3], 256  }
 0x1d7   :  { %335 = vsyncadd [#allocation3], 4294967040 }
 0x1d8   :  { %237 = vsyncpa [#allocation3], 1 }

</bundles_post_ra>
